<compile_context>
chip_gen: v7x
topology: tpu7x:2x2x1
jax: 0.10.0
libtpu: 0.0.40
codegen_flags: <defaults>
</compile_context>

<pallas_src>
import jax
import jax.numpy as jnp
from jax.experimental import pallas as pl
from jax.experimental.pallas import tpu as pltpu


def attflatten_kernel(x_ref, maskb_ref, w1_ref, b1_ref, w2_ref, b2_ref,
                      att_ref, xat_ref):
    # x_ref: (TB, S, H) bf16; maskb_ref: (TB, S) f32 additive bias (0 keep / -1e9 masked).
    TB, S, H = x_ref.shape
    d_inner = w1_ref.shape[1]

    x3 = x_ref[...]                                       # (TB, S, H) bf16
    x2 = x3.reshape(TB * S, H)                            # pure relabel (S % 16 == 0)

    # MLP fc: Linear -> ReLU.  Dropout(0.1) is identity in eval mode.  bf16 MXU, f32 acc.
    h = jnp.dot(x2, w1_ref[...], preferred_element_type=jnp.float32) + b1_ref[...]
    h = jnp.maximum(h, 0.0)                               # (TB*S, d_inner) f32

    # Second Linear (out_size == 1): VPU multiply + lane reduce -> (TB, S) logits
    # (avoids TB degenerate M=1 MXU matmuls and the per-step broadcast of w2).
    hw = h * w2_ref[...]                                  # (TB*S, d_inner)
    logits = jnp.sum(hw.reshape(TB, S, d_inner), axis=-1) + b2_ref[...]   # (TB, S)

    # masked softmax over the sequence (lane) axis; mask is a precomputed additive bias.
    logits = logits + maskb_ref[...]
    m = jnp.max(logits, axis=-1, keepdims=True)           # (TB, 1)
    e = jnp.exp(logits - m)
    att = e / jnp.sum(e, axis=-1, keepdims=True)          # exact divide (returned to caller)
    att_ref[...] = att                                    # dense (TB, S) store

    # flat_glimpses == 1: weighted sum over S as a VPU multiply + sublane reduce.
    xat_ref[...] = jnp.sum(att[:, :, None] * x3.astype(jnp.float32), axis=1)   # (TB, H)


def _choose_tb(B, Sp, H, d_inner, *, rows_target=2048, vmem_budget=40 << 20):
    """Pick the per-step batch block (multiple of 8) and estimate its VMEM footprint."""
    tb = max(1, min(rows_target // max(Sp, 1), B))
    if B > 8:
        # Keep >= 2 grid steps so the 'parallel' axis can shard across v7x's two TensorCores.
        tb = min(tb, -(-B // 2))
    tb = ((tb + 7) // 8) * 8                              # sublane-align the 2-D blocks

    def est(t):
        io_blocks = 2 * (t * Sp * H * 2                   # x block (bf16), double-buffered
                         + t * Sp * 4                     # mask-bias block
                         + t * Sp * 4                     # att block
                         + t * H * 4)                     # xat block
        weights = 2 * (H * d_inner * 2 + 2 * d_inner * 4 + 4)
        interm = t * Sp * d_inner * 4 + t * Sp * H * 4    # h + weighted-sum temporaries
        return io_blocks + weights + interm

    while tb > 8 and est(tb) > vmem_budget:
        tb -= 8
    return tb, est(tb)


def att_flatten(x, x_mask, params):
    """x: (B, S, H) f32; x_mask: (B, 1, 1, S) bool (True = masked/pad position)."""
    B, S, H = x.shape
    w1, b1, w2, b2, wm, bm = params
    d_inner = w1.shape[1]

    # Pad S to a multiple of 16 so in-kernel reshapes are pure relabels for bf16 packing.
    Sp = max(16, ((S + 15) // 16) * 16)

    tb, vmem_est = _choose_tb(B, Sp, H, d_inner)
    n_steps = pl.cdiv(B, tb)
    Bp = n_steps * tb

    # Additive mask bias (0 keep / -1e9 masked).  Padded batch rows and padded sequence
    # columns are fully masked: their att is 0 / uniform and they are sliced off below,
    # so never reduce over Bp/Sp downstream.
    mask_bias = jnp.where(x_mask.reshape(B, S), jnp.float32(-1e9), jnp.float32(0.0))
    mask_bias = jnp.pad(mask_bias, ((0, Bp - B), (0, Sp - S)), constant_values=-1e9)

    # x streamed bf16 from HBM (halves the dominant read); padded rows contribute 0.
    x_p = jnp.pad(x, ((0, Bp - B), (0, Sp - S), (0, 0))).astype(jnp.bfloat16)
    w1_bf = w1.astype(jnp.bfloat16)
    w2_row = w2.reshape(1, d_inner)

    def const_spec(shape):
        return pl.BlockSpec(shape, lambda i: (0,) * len(shape))

    att_dense, xat = pl.pallas_call(
        attflatten_kernel,
        out_shape=(
            jax.ShapeDtypeStruct((Bp, Sp), jnp.float32),   # att (lane-dense, squeezed)
            jax.ShapeDtypeStruct((Bp, H), jnp.float32),    # weighted sum (pre linear_merge)
        ),
        grid_spec=pltpu.PrefetchScalarGridSpec(
            num_scalar_prefetch=0,
            grid=(n_steps,),
            in_specs=[
                pl.BlockSpec((tb, Sp, H), lambda i: (i, 0, 0)),   # x (bf16)
                pl.BlockSpec((tb, Sp), lambda i: (i, 0)),         # mask bias
                const_spec((H, d_inner)),                         # w1 (bf16)
                const_spec((1, d_inner)),                         # b1
                const_spec((1, d_inner)),                         # w2 (row)
                const_spec((1, 1)),                               # b2
            ],
            out_specs=[
                pl.BlockSpec((tb, Sp), lambda i: (i, 0)),         # att
                pl.BlockSpec((tb, H), lambda i: (i, 0)),          # xat (pre-merge)
            ],
        ),
        compiler_params=pltpu.CompilerParams(
            dimension_semantics=("parallel",),
            # Derived from the actual block sizes; capped at v7x's 64 MiB physical VMEM.
            vmem_limit_bytes=int(min(max(2 * vmem_est, 32 << 20), 64 << 20)),
        ),
    )(x_p, mask_bias, w1_bf, b1, w2_row, b2)

    # linear_merge hoisted out of the kernel: one bf16 GEMM with f32 accumulation.
    x_atted = jnp.dot(xat[:B].astype(jnp.bfloat16), wm.astype(jnp.bfloat16),
                      preferred_element_type=jnp.float32) + bm
    # Return att in PyTorch's (B, S, 1) layout (wrapper-side reshape is layout plumbing).
    att = att_dense[:B, :S][..., None]
    return x_atted, att


def init_params(key, hidden_size, d_inner):
    # Deterministic synthetic weights; stored as (in, out) so kernels do x @ W + b.
    ks = jax.random.split(key, 6)
    scale = 0.05
    w1 = scale * jax.random.normal(ks[0], (hidden_size, d_inner), jnp.float32)
    b1 = scale * jax.random.normal(ks[1], (1, d_inner), jnp.float32)
    w2 = scale * jax.random.normal(ks[2], (d_inner, 1), jnp.float32)
    b2 = scale * jax.random.normal(ks[3], (1, 1), jnp.float32)
    wm = scale * jax.random.normal(ks[4], (hidden_size, hidden_size), jnp.float32)
    bm = scale * jax.random.normal(ks[5], (1, hidden_size), jnp.float32)
    return (w1, b1, w2, b2, wm, bm)


def reference(x, x_mask, params):
    # Pure-JAX reference of the PyTorch forward (eval mode), full-precision matmuls.
    w1, b1, w2, b2, wm, bm = params
    hp = jax.lax.Precision.HIGHEST
    h = jnp.maximum(jnp.dot(x, w1, precision=hp) + b1, 0.0)
    att = jnp.dot(h, w2, precision=hp) + b2                       # (B, S, 1)
    mask = x_mask.reshape(x.shape[0], x.shape[1], 1)
    att = jnp.where(mask, -1e9, att)
    att = jax.nn.softmax(att, axis=1)
    x_atted = jnp.sum(att * x, axis=1)                            # (B, H), flat_glimpses = 1
    x_atted = jnp.dot(x_atted, wm, precision=hp) + bm
    return x_atted, att


if __name__ == "__main__":
    B, S, H, D_INNER = 2, 8, 32, 64
    key = jax.random.PRNGKey(0)
    kx, kp = jax.random.split(key)

    x = jax.random.normal(kx, (B, S, H), jnp.float32)
    # x_mask: (B, 1, 1, S) bool, True = masked (pad). Mask last 3 positions of batch 0.
    seq_ids = jnp.arange(S)
    x_mask = jnp.stack([seq_ids >= 5, seq_ids >= S]).reshape(B, 1, 1, S)

    params = init_params(kp, H, D_INNER)

    x_atted, att = att_flatten(x, x_mask, params)
    jax.block_until_ready((x_atted, att))

    ref_out, ref_att = reference(x, x_mask, params)
    # Tolerance covers bf16 MXU inputs (x, w1, linear_merge) with f32 accumulation vs the
    # full-f32 reference; softmax itself uses an exact divide.
    assert jnp.allclose(att, ref_att, atol=1e-2, rtol=1e-2), \
        float(jnp.max(jnp.abs(att - ref_att)))
    assert jnp.allclose(x_atted, ref_out, atol=1e-2, rtol=1e-2), \
        float(jnp.max(jnp.abs(x_atted - ref_out)))

    print("KERNEL_OK")
</pallas_src>

<mosaic_0001>
module attributes {stable_mosaic.version = 11 : i64} {
  func.func @attflatten_kernel(%arg0: i32, %arg1: memref<8x16x32xbf16, #tpu.memory_space<vmem>>, %arg2: memref<8x16xf32, #tpu.memory_space<vmem>>, %arg3: memref<32x64xbf16, #tpu.memory_space<vmem>>, %arg4: memref<1x64xf32, #tpu.memory_space<vmem>>, %arg5: memref<1x64xf32, #tpu.memory_space<vmem>>, %arg6: memref<1x1xf32, #tpu.memory_space<vmem>>, %arg7: memref<8x16xf32, #tpu.memory_space<vmem>>, %arg8: memref<8x32xf32, #tpu.memory_space<vmem>>) attributes {dimension_semantics = [#tpu.dimension_semantics<parallel>], iteration_bounds = array<i64: 1>, scalar_prefetch = 0 : i64, scratch_operands = 0 : i64, tpu.core_type = #tpu.core_type<tc>, window_params = [{transform_indices = @transform_0, window_bounds = array<i64: 8, 16, 32>}, {transform_indices = @transform_1, window_bounds = array<i64: 8, 16>}, {pipeline_mode = #tpu.pipeline_mode<synchronous>, transform_indices = @transform_2, window_bounds = array<i64: 32, 64>}, {pipeline_mode = #tpu.pipeline_mode<synchronous>, transform_indices = @transform_3, window_bounds = array<i64: 1, 64>}, {pipeline_mode = #tpu.pipeline_mode<synchronous>, transform_indices = @transform_4, window_bounds = array<i64: 1, 64>}, {pipeline_mode = #tpu.pipeline_mode<synchronous>, transform_indices = @transform_5, window_bounds = array<i64: 1, 1>}, {transform_indices = @transform_6, window_bounds = array<i64: 8, 16>}, {transform_indices = @transform_7, window_bounds = array<i64: 8, 32>}]} {
    %c0 = arith.constant 0 : index
    %c0_0 = arith.constant 0 : index
    %c0_1 = arith.constant 0 : index
    %0 = vector.load %arg1[%c0, %c0_0, %c0_1] : memref<8x16x32xbf16, #tpu.memory_space<vmem>>, vector<8x16x32xbf16>
    %1 = vector.shape_cast %0 : vector<8x16x32xbf16> to vector<128x32xbf16>
    %c0_2 = arith.constant 0 : index
    %c0_3 = arith.constant 0 : index
    %2 = vector.load %arg3[%c0_2, %c0_3] : memref<32x64xbf16, #tpu.memory_space<vmem>>, vector<32x64xbf16>
    %cst = arith.constant dense<0.000000e+00> : vector<128x64xf32>
    %3 = tpu.matmul %1, %2, %cst {dimension_numbers = #tpu.dot_dimension_numbers<[1], [0], [0], [1], [0, 0, 1, 1], [], []>} : vector<128x32xbf16>, vector<32x64xbf16>, vector<128x64xf32> -> vector<128x64xf32>
    %c0_4 = arith.constant 0 : index
    %c0_5 = arith.constant 0 : index
    %4 = vector.load %arg4[%c0_4, %c0_5] : memref<1x64xf32, #tpu.memory_space<vmem>>, vector<1x64xf32>
    %5 = vector.broadcast %4 : vector<1x64xf32> to vector<128x64xf32>
    %6 = arith.addf %3, %5 : vector<128x64xf32>
    %cst_6 = arith.constant 0.000000e+00 : f32
    %7 = vector.broadcast %cst_6 : f32 to vector<128x64xf32>
    %8 = arith.maximumf %6, %7 : vector<128x64xf32>
    %c0_7 = arith.constant 0 : index
    %c0_8 = arith.constant 0 : index
    %9 = vector.load %arg5[%c0_7, %c0_8] : memref<1x64xf32, #tpu.memory_space<vmem>>, vector<1x64xf32>
    %10 = vector.broadcast %9 : vector<1x64xf32> to vector<128x64xf32>
    %11 = arith.mulf %8, %10 : vector<128x64xf32>
    %12 = vector.shape_cast %11 : vector<128x64xf32> to vector<8x16x64xf32>
    %cst_9 = arith.constant dense<0.000000e+00> : vector<8x16xf32>
    %13 = vector.multi_reduction <add>, %12, %cst_9 [2] : vector<8x16x64xf32> to vector<8x16xf32>
    %c0_10 = arith.constant 0 : index
    %c0_11 = arith.constant 0 : index
    %14 = vector.load %arg6[%c0_10, %c0_11] : memref<1x1xf32, #tpu.memory_space<vmem>>, vector<1x1xf32>
    %15 = vector.broadcast %14 : vector<1x1xf32> to vector<8x16xf32>
    %16 = arith.addf %13, %15 : vector<8x16xf32>
    %c0_12 = arith.constant 0 : index
    %c0_13 = arith.constant 0 : index
    %17 = vector.load %arg2[%c0_12, %c0_13] : memref<8x16xf32, #tpu.memory_space<vmem>>, vector<8x16xf32>
    %18 = arith.addf %16, %17 : vector<8x16xf32>
    %cst_14 = arith.constant dense<0xFF800000> : vector<8xf32>
    %19 = vector.multi_reduction <maximumf>, %18, %cst_14 [1] : vector<8x16xf32> to vector<8xf32>
    %20 = vector.shape_cast %19 : vector<8xf32> to vector<8x1xf32>
    %21 = vector.broadcast %20 : vector<8x1xf32> to vector<8x16xf32>
    %22 = arith.subf %18, %21 : vector<8x16xf32>
    %23 = math.exp %22 : vector<8x16xf32>
    %cst_15 = arith.constant dense<0.000000e+00> : vector<8xf32>
    %24 = vector.multi_reduction <add>, %23, %cst_15 [1] : vector<8x16xf32> to vector<8xf32>
    %25 = vector.shape_cast %24 : vector<8xf32> to vector<8x1xf32>
    %26 = vector.broadcast %25 : vector<8x1xf32> to vector<8x16xf32>
    %27 = arith.divf %23, %26 : vector<8x16xf32>
    %c0_16 = arith.constant 0 : index
    %c0_17 = arith.constant 0 : index
    %28 = vector.load %arg7[%c0_16, %c0_17] : memref<8x16xf32, #tpu.memory_space<vmem>>, vector<8x16xf32>
    tpu.vector_store %arg7[%c0_16, %c0_17], %27 {strides = array<i32>} : memref<8x16xf32, #tpu.memory_space<vmem>>, vector<8x16xf32>,
    %29 = vector.shape_cast %27 : vector<8x16xf32> to vector<8x16x1xf32>
    %30 = arith.extf %0 : vector<8x16x32xbf16> to vector<8x16x32xf32>
    %31 = vector.broadcast %29 : vector<8x16x1xf32> to vector<8x16x32xf32>
    %32 = arith.mulf %31, %30 : vector<8x16x32xf32>
    %cst_18 = arith.constant dense<0.000000e+00> : vector<8x32xf32>
    %33 = vector.multi_reduction <add>, %32, %cst_18 [1] : vector<8x16x32xf32> to vector<8x32xf32>
    %c0_19 = arith.constant 0 : index
    %c0_20 = arith.constant 0 : index
    %34 = vector.load %arg8[%c0_19, %c0_20] : memref<8x32xf32, #tpu.memory_space<vmem>>, vector<8x32xf32>
    tpu.vector_store %arg8[%c0_19, %c0_20], %33 {strides = array<i32>} : memref<8x32xf32, #tpu.memory_space<vmem>>, vector<8x32xf32>,
    return
  }
  func.func @transform_0(%arg0: i32) -> (i32, i32, i32) {
    %c0_i32 = arith.constant 0 : i32
    %c0_i32_0 = arith.constant 0 : i32
    %c0_i32_1 = arith.constant 0 : i32
    return %arg0, %c0_i32, %c0_i32_0 : i32, i32, i32
  }
  func.func @transform_1(%arg0: i32) -> (i32, i32) {
    %c0_i32 = arith.constant 0 : i32
    %c0_i32_0 = arith.constant 0 : i32
    return %arg0, %c0_i32 : i32, i32
  }
  func.func @transform_2(%arg0: i32) -> (i32, i32) {
    %c0_i32 = arith.constant 0 : i32
    %c0_i32_0 = arith.constant 0 : i32
    %c0_i32_1 = arith.constant 0 : i32
    return %c0_i32, %c0_i32_0 : i32, i32
  }
  func.func @transform_3(%arg0: i32) -> (i32, i32) {
    %c0_i32 = arith.constant 0 : i32
    %c0_i32_0 = arith.constant 0 : i32
    %c0_i32_1 = arith.constant 0 : i32
    return %c0_i32, %c0_i32_0 : i32, i32
  }
  func.func @transform_4(%arg0: i32) -> (i32, i32) {
    %c0_i32 = arith.constant 0 : i32
    %c0_i32_0 = arith.constant 0 : i32
    %c0_i32_1 = arith.constant 0 : i32
    return %c0_i32, %c0_i32_0 : i32, i32
  }
  func.func @transform_5(%arg0: i32) -> (i32, i32) {
    %c0_i32 = arith.constant 0 : i32
    %c0_i32_0 = arith.constant 0 : i32
    %c0_i32_1 = arith.constant 0 : i32
    return %c0_i32, %c0_i32_0 : i32, i32
  }
  func.func @transform_6(%arg0: i32) -> (i32, i32) {
    %c0_i32 = arith.constant 0 : i32
    %c0_i32_0 = arith.constant 0 : i32
    return %arg0, %c0_i32 : i32, i32
  }
  func.func @transform_7(%arg0: i32) -> (i32, i32) {
    %c0_i32 = arith.constant 0 : i32
    %c0_i32_0 = arith.constant 0 : i32
    return %arg0, %c0_i32 : i32, i32
  }
}

</mosaic_0001>

<bundles_post_ra>
// kernel: tpu_custom_call.1
= control target key start
LH: loop header
LB: loop body
LE: loop exit
PB: predicated region body
PF: predicated region fallthrough
CT: control target
= control target key end

     0   :  { %s2125_s0 = inlined_call_operand.hbm [shape: bf16[8,16,32], index: 0, kind: input, shape index: {}]   ;;  %s2126_s1 = inlined_call_operand.hbm [shape: f32[8,16], index: 1, kind: input, shape index: {}]   ;;  %s2127_s2 = inlined_call_operand.hbm [shape: bf16[32,64], index: 2, kind: input, shape index: {}]   ;;  %s2128_s3 = inlined_call_operand.vmem [shape: f32[1,64], index: 3, kind: input, shape index: {}]   ;;  %s2129_s4 = inlined_call_operand.vmem [shape: f32[1,64], index: 4, kind: input, shape index: {}]   ;;  %s2130_s5 = inlined_call_operand.<no memory space> [shape: f32[1,1], index: 5, kind: input, shape index: {}]   ;;  %s2131_s6 = inlined_call_operand.hbm [shape: f32[8,16], index: 6, kind: output, shape index: {0}]   ;;  %s2132_s7 = inlined_call_operand.hbm [shape: f32[8,32], index: 7, kind: output, shape index: {1}]  }
   0x1   :  { %v13_v0 = vstv %s2130_s5 }
   0x2   :  { %14 = vst [vmem:[#allocation2] sm:$0x1] %v13_v0 }
   0x3   :  { %15 = vsyncpa [#allocation4], 0 }
   0x4   :  { %16 = vsyncpa [#allocation7], 0 }
   0x5   :  { %17 = vsyncpa [#allocation5], 0 }
   0x6   :  { %18 = vsyncpa [#allocation11], 0  ;;  %s1531_s26 = smov [#allocation6]   ;;  %s1532_s28 = smov [#allocation3]  }
   0x7   :  { %s37_s27 = sshll.u32 %s1531_s26, 4  ;;  %s24_s29 = sshll.u32 %s1532_s28, 4  ;;  %s38_s27 = int_to_ptr.vmem [resolvable:$true] %s37_s27  ;;  %s1582_s29 = int_to_ptr.vmem [resolvable:$true] %s24_s29 }
   0x8   :  { %s1413_s9 = scalar_lea.hbm %s2126_s1, 128 }
   0x9   :  { %p1414_p0 = scmp.ne.s32.totalorder %s2126_s1, %s1413_s9  ;;  %p1417_p1 = scmp.lt.u32.totalorder %s1413_s9, %s2126_s1 }
   0xb   :  { %p1419_p2 = pnand %p1417_p1, %p1414_p0 }
   0xd   :  { %1422 = shalt.err (!%p1419_p2)
}
   0xe   :  { %s1423_s13 = scalar_lea.vmem %s38_s27, 128  ;;  %p1428_p4 = scmp.lt.s32.totalorder %s38_s27, %s38_s27 }
   0xf   :  { %p1424_p3 = scmp.ne.s32.totalorder %s38_s27, %s1423_s13  ;;  %p1429_p5 = scmp.lt.s32.totalorder %s1423_s13, %s1423_s13 }
  0x11   :  { %p1430_p6 = por %p1429_p5, %p1428_p4 }
  0x13   :  { %p1431_p7 = pnand %p1430_p6, %p1424_p3 }
  0x15   :  { %1434 = shalt.err (!%p1431_p7)
}
  0x16   :  { %40 = dma.hbm_to_vmem [thread:$0]  %s2126_s1, 128, %s38_s27, [#allocation7]  }
  0x17   :  { %s1435_s18 = scalar_lea.hbm %s2125_s0, 1024 }
  0x18   :  { %p1436_p8 = scmp.ne.s32.totalorder %s2125_s0, %s1435_s18  ;;  %p1439_p9 = scmp.lt.u32.totalorder %s1435_s18, %s2125_s0 }
  0x1a   :  { %p1441_p10 = pnand %p1439_p9, %p1436_p8 }
  0x1c   :  { %1444 = shalt.err (!%p1441_p10)
}
  0x1d   :  { %s1445_s23 = scalar_lea.vmem %s1582_s29, 1024  ;;  %p1450_p12 = scmp.lt.s32.totalorder %s1582_s29, %s1582_s29 }
  0x1e   :  { %p1446_p11 = scmp.ne.s32.totalorder %s1582_s29, %s1445_s23  ;;  %p1451_p13 = scmp.lt.s32.totalorder %s1445_s23, %s1445_s23 }
  0x20   :  { %p1452_p0 = por %p1451_p13, %p1450_p12 }
  0x22   :  { %p1453_p1 = pnand %p1452_p0, %p1446_p11 }
  0x24   :  { %1456 = shalt.err (!%p1453_p1)
}
  0x25   :  { %s1533_s1 = smov 64   ;;  %s1534_s24 = smov 4  }
  0x26   :  { %30 = dma.hbm_to_vmem [thread:$0]  %s2125_s0, 1024, %s1582_s29, [#allocation4], %s1533_s1, %s1533_s1, %s1534_s24  }
  0x27   :  { %s1535_s27 = smov [#allocation8]   ;;  %s1457_s9 = scalar_lea.hbm %s2127_s2, 256 }
  0x28   :  { %s46_s28 = sshll.u32 %s1535_s27, 4  ;;  %p1458_p2 = scmp.ne.s32.totalorder %s2127_s2, %s1457_s9  ;;  %s47_s28 = int_to_ptr.vmem [resolvable:$true] %s46_s28 }
  0x29   :  { %p1461_p3 = scmp.lt.u32.totalorder %s1457_s9, %s2127_s2 }
  0x2b   :  { %p1463_p4 = pnand %p1461_p3, %p1458_p2 }
  0x2d   :  { %1466 = shalt.err (!%p1463_p4)
}
  0x2e   :  { %s1467_s13 = scalar_lea.vmem %s47_s28, 256  ;;  %p1472_p6 = scmp.lt.s32.totalorder %s47_s28, %s47_s28 }
  0x2f   :  { %p1468_p5 = scmp.ne.s32.totalorder %s47_s28, %s1467_s13  ;;  %p1473_p7 = scmp.lt.s32.totalorder %s1467_s13, %s1467_s13 }
  0x31   :  { %p1474_p8 = por %p1473_p7, %p1472_p6 }
  0x33   :  { %p1475_p9 = pnand %p1474_p8, %p1468_p5 }
  0x35   :  { %1478 = shalt.err (!%p1475_p9)
}
  0x36   :  { %52 = dma.hbm_to_vmem [thread:$0]  %s2127_s2, 256, %s47_s28, [#allocation7], %s1533_s1, %s1533_s1, %s1534_s24  }
  0x37   :  { %1523 = dma.done.wait [#allocation4], 1024  }
  0x38   :  { %1524 = vsyncadd [#allocation4], 4294966272 }
  0x39   :  { %1525 = dma.done.wait [#allocation7], 384  }
  0x3a   :  { %1526 = vsyncadd [#allocation7], 4294966912  ;;  %v386_v1 = vlaneseq  ;;  %v1536_v2 = vmov 0   ;;  %v1343_v4 = vld [vmem:[#allocation8] sm:$0xff]   ;;  %v1344_v5 = vld [vmem:[#allocation8 + $0x8] sm:$0xff]   ;;  %vm148_vm0 = vcmask 261120  }
  0x3b   :  { %1341 = vset.pattern.permute.xlu0 %v1536_v2  ;;  %1342 = vset.pattern.permute.xlu1 %v1536_v2  ;;  %v1628_v6 = vld [vmem:[#allocation3] sm:$0xff]   ;;  %v1633_v9 = vld [vmem:[#allocation3 + $0x8] sm:$0xff]   ;;  %v1635_v11 = vld [vmem:[#allocation3 + $0x10] sm:$0xff]   ;;  %vm309_vm1 = vcmask 523264   ;;  %vm581_vm2 = vcmask 130112   ;;  %vm646_vm3 = vcmask 1041409  }
  0x3c   :  { %v1626_v3 = vshrl.u32 %v386_v1, 7  ;;  %1309 = vmatprep.subr.bf16.mxu0 %v1343_v4  ;;  %1329 = vmatprep.subr.bf16.mxu1 %v1343_v4  ;;  %v77_v7 = vld [vmem:[#allocation3 + $0x20] sm:$0xff]   ;;  %v79_v10 = vld [vmem:[#allocation3 + $0x28] sm:$0xff]   ;;  %v81_v12 = vld [vmem:[#allocation3 + $0x30] sm:$0xff]   ;;  %vm648_vm4 = vcmask 1042434   ;;  %vm650_vm5 = vcmask 1043459  }
  0x3d   :  { %1310 = vmatpush3.bf16.msra.mxu0 %v1343_v4  ;;  %1331 = vmatpush3.bf16.msra.mxu1 %v1343_v4  ;;  %v1637_v13 = vld [vmem:[#allocation6] sm:$0xff]  ;;  %v1298_v14 = vld [vmem:[#allocation2] ss:$0 sm:$0xff]  ;;  %vm652_vm6 = vcmask 1044484   ;;  %vm654_vm7 = vcmask 1045509   ;;  %vm656_vm8 = vcmask 1046534  }
  0x3e   :  { %v1631_v8 = vsub.s32 0, %v1626_v3  ;;  %1311 = vmatprep.subr.bf16.mxu0 %v1344_v5  ;;  %1330 = vmatprep.subr.bf16.mxu1 %v1344_v5  ;;  %v1645_v16 = vsub.s32 4, %v1626_v3  ;;  %v1648_v17 = vsub.s32 1, %v1626_v3  ;;  %v1656_v19 = vsub.s32 5, %v1626_v3  ;;  %v1660_v20 = vld [vmem:[#allocation3 + $0x18] sm:$0xff]  }
  0x3f   :  { %1313 = vmatprep.mubr.msk.bf16.mxu0 %vm148_vm0, %v1628_v6  ;;  %1321 = vmatprep.mubr.msk.bf16.mxu1 %vm148_vm0, %v77_v7  ;;  %v83_v21 = vld [vmem:[#allocation3 + $0x38] sm:$0xff]   ;;  %v1668_v24 = vsub.s32 6, %v1626_v3  ;;  %v1671_v25 = vsub.s32 2, %v1626_v3  ;;  %v1681_v28 = vsub.s32 3, %v1626_v3  ;;  %vm658_vm9 = vcmask 1047559  }
  0x40   :  { %v389_v15 = vrot.slane %v1637_v13, %v1631_v8  ;;  %365 = vperm.xlu0 %1341, %v1298_v14   ;;  %v433_v18 = vrot.slane %v1637_v13, %v1645_v16  ;;  %v400_v22 = vrot.slane %v1637_v13, %v1648_v17  ;;  %v444_v23 = vrot.slane %v1637_v13, %v1656_v19  ;;  %v1688_v30 = vld [vmem:[%s2128_s3] ss:$0 sm:$0xff]  ;;  %s1537_s3 = smov [#allocation9]  }
  0x41   :  { %1312 = vmatpush3.bf16.msra.mxu0 %v1344_v5  ;;  %1332 = vmatpush3.bf16.msra.mxu1 %v1344_v5  ;;  %v455_v26 = vrot.slane %v1637_v13, %v1668_v24  ;;  %v411_v27 = vrot.slane %v1637_v13, %v1671_v25  ;;  %v422_v29 = vrot.slane %v1637_v13, %v1681_v28  ;;  %v1697_v41 = vld [vmem:[%s2129_s4] ss:$0 sm:$0xff]  ;;  %vm661_vm10 = vcmask 130048   ;;  %s1254_s4 = sshll.u32 %s1537_s3, 4  ;;  %s1255_s4 = int_to_ptr.vmem [resolvable:$true] %s1254_s4 }
  0x42   :  { %391 = vbcast.lane.b32.xlu1 %v389_v15, 256  ;;  %s1479_s17 = scalar_lea.vmem %s1255_s4, 128  ;;  %p1484_p11 = scmp.lt.s32.totalorder %s1255_s4, %s1255_s4 }
  0x43   :  { %p1480_p10 = scmp.ne.s32.totalorder %s1255_s4, %s1479_s17  ;;  %p1485_p12 = scmp.lt.s32.totalorder %s1479_s17, %s1479_s17 }
  0x44   :  { %1314 = vmatmul.mubr.msk.bf16.vlgmr.msra.gmra.mrb[0].mxu0 %vm148_vm0, %v1633_v9  ;;  %1322 = vmatmul.mubr.msk.bf16.vlgmr.msra.gmra.mrb[0].mxu1 %vm148_vm0, %v79_v10 }
  0x45   :  { %1317 = vmatprep.mubr.msk.bf16.mxu0 %vm148_vm0, %v1635_v11  ;;  %1325 = vmatprep.mubr.msk.bf16.mxu1 %vm148_vm0, %v81_v12  ;;  %p1486_p13 = por %p1485_p12, %p1484_p11 }
  0x46   :  { %395 = vbcast.lane.b32.xlu1 %v389_v15, 264  ;;  %435 = vbcast.lane.b32.xlu0 %v433_v18, 256 }
  0x47   :  { %p1487_p0 = pnand %p1486_p13, %p1480_p10 }
  0x4a   :  { %402 = vbcast.lane.b32.xlu1 %v400_v22, 256  ;;  %446 = vbcast.lane.b32.xlu0 %v444_v23, 256 }
  0x4c   :  { %1318 = vmatmul.mubr.msk.bf16.gmra.mrb[4].mxu0 %vm148_vm0, %v1660_v20  ;;  %1326 = vmatmul.mubr.msk.bf16.gmra.mrb[4].mxu1 %vm148_vm0, %v83_v21 }
  0x4e   :  { %406 = vbcast.lane.b32.xlu1 %v400_v22, 264  ;;  %457 = vbcast.lane.b32.xlu0 %v455_v26, 256 }
  0x52   :  { %413 = vbcast.lane.b32.xlu1 %v411_v27, 256 }
  0x56   :  { %417 = vbcast.lane.b32.xlu1 %v411_v27, 264 }
  0x5a   :  { %424 = vbcast.lane.b32.xlu1 %v422_v29, 256 }
  0x5e   :  { %428 = vbcast.lane.b32.xlu1 %v422_v29, 264 }
  0x62   :  { %439 = vbcast.lane.b32.xlu1 %v433_v18, 264 }
  0x66   :  { %450 = vbcast.lane.b32.xlu1 %v444_v23, 264 }
  0x6a   :  { %461 = vbcast.lane.b32.xlu1 %v455_v26, 264 }
 0x117   :  { %v1315_v31 = vpop.f32.mrb[0].mxu0  ;;  %v1323_v32 = vpop.f32.mrb[0].mxu1 }
 0x118   :  { %v216_v33 = vadd.f32 %v1315_v31, %v1688_v30  ;;  %v248_v34 = vadd.f32 %v1323_v32, %v1688_v30  ;;  %v207_v35 = vpop.f32.mrb[1].mxu0  ;;  %v239_v36 = vpop.f32.mrb[1].mxu1 }
 0x119   :  { %v208_v37 = vadd.f32 %v1688_v30, %v207_v35  ;;  %v240_v38 = vadd.f32 %v1688_v30, %v239_v36  ;;  %v1316_v39 = vpop.f32.mrb[2].mxu0  ;;  %v1324_v40 = vpop.f32.mrb[2].mxu1 }
 0x11a   :  { %v272_v42 = vmax.f32 %v216_v33, 0.0  ;;  %v280_v43 = vmax.f32 %v248_v34, 0.0  ;;  %v219_v44 = vadd.f32 %v1316_v39, %v1688_v30  ;;  %v251_v45 = vadd.f32 %v1324_v40, %v1688_v30  ;;  %v210_v46 = vpop.f32.mrb[3].mxu0  ;;  %v242_v47 = vpop.f32.mrb[3].mxu1 }
 0x11b   :  { %v270_v48 = vmax.f32 %v208_v37, 0.0  ;;  %v278_v52 = vmax.f32 %v240_v38, 0.0  ;;  %v211_v54 = vadd.f32 %v1688_v30, %v210_v46  ;;  %v243_v55 = vadd.f32 %v1688_v30, %v242_v47 }
 0x11c   :  { %v273_v49 = vmax.f32 %v219_v44, 0.0  ;;  %v303_v50 = vmul.f32 %v1697_v41, %v280_v43  ;;  %v295_v51 = vmul.f32 %v1697_v41, %v272_v42  ;;  %v281_v53 = vmax.f32 %v251_v45, 0.0 }
 0x11d   :  { %v293_v59 = vmul.f32 %v1697_v41, %v270_v48  ;;  %v271_v0 = vmax.f32 %v211_v54, 0.0  ;;  %v279_v2 = vmax.f32 %v243_v55, 0.0  ;;  %v301_v7 = vmul.f32 %v1697_v41, %v278_v52 }
 0x11e   :  { %v340_v56 = vsel %vm309_vm1, %v303_v50, 0.0  ;;  %v316_v57 = vsel %vm309_vm1, %v295_v51, 0.0  ;;  %v296_v58 = vmul.f32 %v1697_v41, %v273_v49  ;;  %v304_v5 = vmul.f32 %v1697_v41, %v281_v53 }
 0x11f   :  { %341 = vadd.xlane.f32.xlu0 %v340_v56  ;;  %317 = vadd.xlane.f32.xlu1 %v316_v57  ;;  %v1319_v60 = vpop.f32.mrb[4].mxu0  ;;  %v1327_v61 = vpop.f32.mrb[4].mxu1  ;;  %v310_v15 = vsel %vm309_vm1, %v293_v59, 0.0  ;;  %v334_v26 = vsel %vm309_vm1, %v301_v7, 0.0  ;;  %v302_v27 = vmul.f32 %v1697_v41, %v279_v2  ;;  %v294_v29 = vmul.f32 %v1697_v41, %v271_v0 }
 0x120   :  { %v223_v62 = vpop.f32.mrb[5].mxu0  ;;  %v255_v63 = vpop.f32.mrb[5].mxu1  ;;  %v232_v12 = vadd.f32 %v1319_v60, %v1688_v30  ;;  %v319_v14 = vsel %vm309_vm1, %v296_v58, 0.0  ;;  %v264_v23 = vadd.f32 %v1327_v61, %v1688_v30  ;;  %v343_v33 = vsel %vm309_vm1, %v304_v5, 0.0 }
 0x121   :  { %v1320_v4 = vpop.f32.mrb[6].mxu0  ;;  %v1328_v10 = vpop.f32.mrb[6].mxu1  ;;  %v224_v35 = vadd.f32 %v1688_v30, %v223_v62  ;;  %v337_v37 = vsel %vm309_vm1, %v302_v27, 0.0  ;;  %v313_v38 = vsel %vm309_vm1, %v294_v29, 0.0  ;;  %v256_v45 = vadd.f32 %v1688_v30, %v255_v63 }
 0x122   :  { %v235_v18 = vadd.f32 %v1320_v4, %v1688_v30  ;;  %v226_v21 = vpop.f32.mrb[7].mxu0  ;;  %v258_v22 = vpop.f32.mrb[7].mxu1  ;;  %v276_v31 = vmax.f32 %v232_v12, 0.0  ;;  %v267_v34 = vadd.f32 %v1328_v10, %v1688_v30  ;;  %v284_v36 = vmax.f32 %v264_v23, 0.0 }
 0x123   :  { %320 = vadd.xlane.f32.xlu1 %v319_v14  ;;  %311 = vadd.xlane.f32.xlu0 %v310_v15  ;;  %v227_v39 = vadd.f32 %v1688_v30, %v226_v21  ;;  %v274_v44 = vmax.f32 %v224_v35, 0.0  ;;  %v259_v46 = vadd.f32 %v1688_v30, %v258_v22  ;;  %v282_v52 = vmax.f32 %v256_v45, 0.0  ;;  %v392_v2 = vpop.permute.xlu1 %391  ;;  %v1748_v15 = vpop.permute.xlu0 %365 }
 0x124   :  { %v277_v32 = vmax.f32 %v235_v18, 0.0  ;;  %v285_v40 = vmax.f32 %v267_v34, 0.0  ;;  %v299_v43 = vmul.f32 %v1697_v41, %v276_v31  ;;  %v307_v47 = vmul.f32 %v1697_v41, %v284_v36 }
 0x125   :  { %v275_v48 = vmax.f32 %v227_v39, 0.0  ;;  %v283_v53 = vmax.f32 %v259_v46, 0.0  ;;  %v297_v30 = vmul.f32 %v1697_v41, %v274_v44  ;;  %v305_v60 = vmul.f32 %v1697_v41, %v282_v52 }
 0x126   :  { %v300_v42 = vmul.f32 %v1697_v41, %v277_v32  ;;  %v328_v50 = vsel %vm309_vm1, %v299_v43, 0.0  ;;  %v308_v51 = vmul.f32 %v1697_v41, %v285_v40  ;;  %v352_v55 = vsel %vm309_vm1, %v307_v47, 0.0 }
 0x127   :  { %344 = vadd.xlane.f32.xlu1 %v343_v33  ;;  %335 = vadd.xlane.f32.xlu0 %v334_v26  ;;  %v298_v56 = vmul.f32 %v1697_v41, %v275_v48  ;;  %v322_v58 = vsel %vm309_vm1, %v297_v30, 0.0  ;;  %v306_v59 = vmul.f32 %v1697_v41, %v283_v53  ;;  %v346_v62 = vsel %vm309_vm1, %v305_v60, 0.0  ;;  %v396_v4 = vpop.permute.xlu1 %395  ;;  %v436_v21 = vpop.permute.xlu0 %435 }
 0x128   :  { %v331_v49 = vsel %vm309_vm1, %v300_v42, 0.0  ;;  %v355_v54 = vsel %vm309_vm1, %v308_v51, 0.0  ;;  %v1744_v63 = vsub.s32 7, %v1626_v3 }
 0x129   :  { %v325_v57 = vsel %vm309_vm1, %v298_v56, 0.0  ;;  %v349_v61 = vsel %vm309_vm1, %v306_v59, 0.0 }
 0x12a   :  { %v466_v0 = vrot.slane %v1637_v13, %v1744_v63 }
 0x12b   :  { %338 = vadd.xlane.f32.xlu1 %v337_v37  ;;  %314 = vadd.xlane.f32.xlu0 %v313_v38  ;;  %v403_v5 = vpop.permute.xlu1 %402  ;;  %v447_v23 = vpop.permute.xlu0 %446 }
 0x12f   :  { %332 = vadd.xlane.f32.xlu1 %v331_v49  ;;  %329 = vadd.xlane.f32.xlu0 %v328_v50  ;;  %v407_v41 = vpop.permute.xlu1 %406  ;;  %v458_v27 = vpop.permute.xlu0 %457 }
 0x133   :  { %356 = vadd.xlane.f32.xlu1 %v355_v54  ;;  %353 = vadd.xlane.f32.xlu0 %v352_v55  ;;  %v414_v7 = vpop.permute.xlu1 %413 }
 0x137   :  { %326 = vadd.xlane.f32.xlu1 %v325_v57  ;;  %323 = vadd.xlane.f32.xlu0 %v322_v58  ;;  %v418_v10 = vpop.permute.xlu1 %417 }
 0x13b   :  { %350 = vadd.xlane.f32.xlu1 %v349_v61  ;;  %347 = vadd.xlane.f32.xlu0 %v346_v62  ;;  %v425_v12 = vpop.permute.xlu1 %424 }
 0x13f   :  { %v429_v14 = vpop.permute.xlu1 %428 }
 0x143   :  { %v440_v18 = vpop.permute.xlu1 %439 }
 0x147   :  { %v451_v22 = vpop.permute.xlu1 %450 }
 0x14b   :  { %v462_v26 = vpop.permute.xlu1 %461 }
 0x14c   :  { %472 = vbcast.lane.b32.xlu1 %v466_v0, 264 }
 0x151   :  { %468 = vbcast.lane.b32.xlu0 %v466_v0, 256 }
 0x1ac   :  { %v342_v29 = vpop.xlane.xlu0 %341  ;;  %v318_v13 = vpop.xlane.xlu1 %317 }
 0x1ad   :  { %v370_v31 = vadd.f32 %v1748_v15, %v318_v13  ;;  %v378_v32 = vadd.f32 %v1748_v15, %v342_v29 }
 0x1af   :  { %v1752_v33 = vadd.f32 %v403_v5, %v370_v31  ;;  %v1756_v37 = vadd.f32 %v447_v23, %v378_v32 }
 0x1b0   :  { %v321_v34 = vpop.xlane.xlu1 %320  ;;  %v312_v35 = vpop.xlane.xlu0 %311 }
 0x1b1   :  { %v371_v36 = vadd.f32 %v1748_v15, %v321_v34  ;;  %529 = vperm.xlu0 %1341, %v1752_v33   ;;  %v368_v39 = vadd.f32 %v1748_v15, %v312_v35 }
 0x1b3   :  { %v1758_v38 = vadd.f32 %v407_v41, %v371_v36  ;;  %v1764_v44 = vadd.f32 %v392_v2, %v368_v39  ;;  %v571_v36 = vand.u32 127, %v386_v1 }
 0x1b4   :  { %v345_v40 = vpop.xlane.xlu1 %344  ;;  %v336_v42 = vpop.xlane.xlu0 %335 }
 0x1b5   :  { %v379_v43 = vadd.f32 %v1748_v15, %v345_v40  ;;  %532 = vperm.xlu1 %1342, %v1758_v38   ;;  %553 = vperm.xlu0 %1341, %v1756_v37   ;;  %v376_v46 = vadd.f32 %v1748_v15, %v336_v42  ;;  %v576_v39 = vadd.s32 4294967288, %v571_v36 }
 0x1b7   :  { %v1766_v45 = vadd.f32 %v451_v22, %v379_v43  ;;  %v1772_v50 = vadd.f32 %v436_v21, %v376_v46  ;;  %v1816_v43 = vsub.s32 %v576_v39, %v1626_v3  ;;  %v1819_v46 = vsub.s32 %v571_v36, %v1626_v3 }
 0x1b8   :  { %v339_v47 = vpop.xlane.xlu1 %338  ;;  %v315_v48 = vpop.xlane.xlu0 %314 }
 0x1b9   :  { %v369_v49 = vadd.f32 %v1748_v15, %v315_v48  ;;  %556 = vperm.xlu1 %1342, %v1766_v45   ;;  %523 = vperm.xlu0 %1341, %v1764_v44   ;;  %v377_v51 = vadd.f32 %v1748_v15, %v339_v47 }
 0x1bb   :  { %v1775_v52 = vadd.f32 %v396_v4, %v369_v49  ;;  %v1780_v56 = vadd.f32 %v440_v18, %v377_v51 }
 0x1bc   :  { %v333_v53 = vpop.xlane.xlu1 %332  ;;  %v330_v54 = vpop.xlane.xlu0 %329 }
 0x1bd   :  { %v374_v55 = vadd.f32 %v1748_v15, %v330_v54  ;;  %547 = vperm.xlu0 %1341, %v1772_v50   ;;  %526 = vperm.xlu1 %1342, %v1775_v52   ;;  %v375_v30 = vadd.f32 %v1748_v15, %v333_v53 }
 0x1bf   :  { %v1783_v57 = vadd.f32 %v425_v12, %v374_v55  ;;  %v1787_v60 = vadd.f32 %v429_v14, %v375_v30 }
 0x1c0   :  { %v357_v58 = vpop.xlane.xlu1 %356  ;;  %v354_v59 = vpop.xlane.xlu0 %353 }
 0x1c1   :  { %550 = vperm.xlu1 %1342, %v1780_v56   ;;  %541 = vperm.xlu0 %1341, %v1783_v57  }
 0x1c4   :  { %v327_v61 = vpop.xlane.xlu1 %326  ;;  %v324_v62 = vpop.xlane.xlu0 %323 }
 0x1c5   :  { %v373_v0 = vadd.f32 %v1748_v15, %v327_v61  ;;  %v372_v2 = vadd.f32 %v1748_v15, %v324_v62  ;;  %544 = vperm.xlu1 %1342, %v1787_v60  }
 0x1c7   :  { %v1792_v4 = vadd.f32 %v418_v10, %v373_v0  ;;  %v1794_v5 = vadd.f32 %v414_v7, %v372_v2  ;;  %v383_v10 = vadd.f32 %v1748_v15, %v357_v58  ;;  %v382_v7 = vadd.f32 %v1748_v15, %v354_v59 }
 0x1c8   :  { %v351_v41 = vpop.xlane.xlu1 %350  ;;  %v348_v12 = vpop.xlane.xlu0 %347 }
 0x1c9   :  { %v381_v18 = vadd.f32 %v1748_v15, %v351_v41  ;;  %v380_v21 = vadd.f32 %v1748_v15, %v348_v12  ;;  %538 = vperm.xlu1 %1342, %v1792_v4   ;;  %535 = vperm.xlu0 %1341, %v1794_v5  }
 0x1cb   :  { %v1800_v14 = vadd.f32 %v462_v26, %v381_v18  ;;  %v1802_v22 = vadd.f32 %v458_v27, %v380_v21 }
 0x1cc   :  { %v473_v23 = vpop.permute.xlu1 %472  ;;  %v469_v29 = vpop.permute.xlu0 %468 }
 0x1cd   :  { %562 = vperm.xlu1 %1342, %v1800_v14   ;;  %559 = vperm.xlu0 %1341, %v1802_v22   ;;  %v1808_v13 = vadd.f32 %v473_v23, %v383_v10  ;;  %v1810_v31 = vadd.f32 %v469_v29, %v382_v7 }
 0x1d1   :  { %568 = vperm.xlu1 %1342, %v1808_v13   ;;  %565 = vperm.xlu0 %1341, %v1810_v31  }
 0x230   :  { %v530_v26 = vpop.permute.xlu0 %529 }
 0x231   :  { %v586_v1 = vrot.slane %v530_v26, %v1819_v46 }
 0x234   :  { %v533_v27 = vpop.permute.xlu1 %532  ;;  %v554_v32 = vpop.permute.xlu0 %553 }
 0x235   :  { %v590_v51 = vrot.slane %v533_v27, %v1816_v43  ;;  %v622_v21 = vrot.slane %v554_v32, %v1819_v46 }
 0x237   :  { %v591_v62 = vsel %vm581_vm2, %v590_v51, %v586_v1 }
 0x238   :  { %v557_v34 = vpop.permute.xlu1 %556  ;;  %v524_v35 = vpop.permute.xlu0 %523 }
 0x239   :  { %v575_v53 = vrot.slane %v524_v35, %v1819_v46  ;;  %v626_v2 = vrot.slane %v557_v34, %v1816_v43 }
 0x23c   :  { %v527_v15 = vpop.permute.xlu1 %526  ;;  %v548_v40 = vpop.permute.xlu0 %547 }
 0x23d   :  { %v580_v47 = vrot.slane %v527_v15, %v1816_v43  ;;  %v613_v12 = vrot.slane %v548_v40, %v1819_v46  ;;  %v627_v15 = vsel %vm581_vm2, %v626_v2, %v622_v21 }
 0x23f   :  { %v582_v54 = vsel %vm581_vm2, %v580_v47, %v575_v53 }
 0x240   :  { %v551_v42 = vpop.permute.xlu1 %550  ;;  %v542_v48 = vpop.permute.xlu0 %541  ;;  %v647_v41 = vsel %vm646_vm3, %v591_v62, %v582_v54 }
 0x241   :  { %v617_v3 = vrot.slane %v551_v42, %v1816_v43  ;;  %v604_v0 = vrot.slane %v542_v48, %v1819_v46 }
 0x243   :  { %v618_v26 = vsel %vm581_vm2, %v617_v3, %v613_v12 }
 0x244   :  { %v545_v49 = vpop.permute.xlu1 %544 }
 0x245   :  { %v608_v55 = vrot.slane %v545_v49, %v1816_v43 }
 0x247   :  { %v609_v23 = vsel %vm581_vm2, %v608_v55, %v604_v0 }
 0x248   :  { %v539_v30 = vpop.permute.xlu1 %538  ;;  %v536_v58 = vpop.permute.xlu0 %535 }
 0x249   :  { %v599_v59 = vrot.slane %v539_v30, %v1816_v43  ;;  %v595_v61 = vrot.slane %v536_v58, %v1819_v46 }
 0x24b   :  { %v600_v18 = vsel %vm581_vm2, %v599_v59, %v595_v61 }
 0x24c   :  { %v649_v29 = vsel %vm648_vm4, %v600_v18, %v647_v41  ;;  %v563_v10 = vpop.permute.xlu1 %562  ;;  %v560_v7 = vpop.permute.xlu0 %559 }
 0x24d   :  { %v651_v27 = vsel %vm650_vm5, %v609_v23, %v649_v29  ;;  %v635_v34 = vrot.slane %v563_v10, %v1816_v43  ;;  %v631_v35 = vrot.slane %v560_v7, %v1819_v46 }
 0x24e   :  { %v653_v36 = vsel %vm652_vm6, %v618_v26, %v651_v27 }
 0x24f   :  { %v636_v32 = vsel %vm581_vm2, %v635_v34, %v631_v35  ;;  %v655_v42 = vsel %vm654_vm7, %v627_v15, %v653_v36 }
 0x250   :  { %v569_v39 = vpop.permute.xlu1 %568  ;;  %v566_v40 = vpop.permute.xlu0 %565  ;;  %v657_v51 = vsel %vm656_vm8, %v636_v32, %v655_v42 }
 0x251   :  { %v644_v47 = vrot.slane %v569_v39, %v1816_v43  ;;  %v640_v48 = vrot.slane %v566_v40, %v1819_v46 }
 0x253   :  { %v645_v49 = vsel %vm581_vm2, %v644_v47, %v640_v48 }
 0x254   :  { %v659_v53 = vsel %vm658_vm9, %v645_v49, %v657_v51 }
 0x255   :  { %v662_v1 = vsel %vm661_vm10, %v659_v53, -inf }
 0x256   :  { %663 = vmax.xlane.f32.xlu0 %v662_v1 }
 0x2e3   :  { %v664_v54 = vpop.xlane.xlu0 %663 }
 0x2e4   :  { %v669_v55 = vrot.slane %v664_v54, %v1631_v8  ;;  %v673_v58 = vrot.slane %v664_v54, %v1648_v17  ;;  %v685_v3 = vrot.slane %v664_v54, %v1645_v16  ;;  %v1861_v41 = vrot.slane %v664_v54, %v1744_v63 }
 0x2e5   :  { %v677_v18 = vrot.slane %v664_v54, %v1671_v25  ;;  %v681_v10 = vrot.slane %v664_v54, %v1681_v28  ;;  %v693_v48 = vrot.slane %v664_v54, %v1668_v24 }
 0x2e6   :  { %v706_v30 = vsub.f32 %v1764_v44, %v669_v55  ;;  %v707_v59 = vsub.f32 %v1775_v52, %v669_v55  ;;  %v708_v62 = vsub.f32 %v1752_v33, %v673_v58  ;;  %v714_v0 = vsub.f32 %v1772_v50, %v685_v3 }
 0x2e7   :  { %v709_v44 = vsub.f32 %v1758_v38, %v673_v58  ;;  %v720_v52 = vsub.f32 %v1810_v31, %v1861_v41  ;;  %v710_v33 = vsub.f32 %v1794_v5, %v677_v18  ;;  %v711_v7 = vsub.f32 %v1792_v4, %v677_v18 }
 0x2e8   :  { %v722_v61 = vmul.f32 1.442695, %v706_v30  ;;  %v724_v2 = vmul.f32 1.442695, %v707_v59  ;;  %v726_v12 = vmul.f32 1.442695, %v708_v62  ;;  %v712_v5 = vsub.f32 %v1783_v57, %v681_v10 }
 0x2e9   :  { %v738_v21 = vmul.f32 1.442695, %v714_v0  ;;  %v728_v23 = vmul.f32 1.442695, %v709_v44  ;;  %v750_v29 = vmul.f32 1.442695, %v720_v52  ;;  %v713_v4 = vsub.f32 %v1787_v60, %v681_v10 }
 0x2ea   :  { %1361 = vpow2.f32 %v722_v61  ;;  %v730_v38 = vmul.f32 1.442695, %v710_v33  ;;  %v732_v31 = vmul.f32 1.442695, %v711_v7  ;;  %v734_v35 = vmul.f32 1.442695, %v712_v5 }
 0x2eb   :  { %1363 = vpow2.f32 %v724_v2  ;;  %v689_v57 = vrot.slane %v664_v54, %v1656_v19  ;;  %v715_v32 = vsub.f32 %v1780_v56, %v685_v3  ;;  %v736_v39 = vmul.f32 1.442695, %v713_v4 }
 0x2ec   :  { %1365 = vpow2.f32 %v726_v12  ;;  %v718_v53 = vsub.f32 %v1802_v22, %v693_v48  ;;  %v719_v55 = vsub.f32 %v1800_v14, %v693_v48 }
 0x2ed   :  { %1367 = vpow2.f32 %v738_v21  ;;  %v716_v60 = vsub.f32 %v1756_v37, %v689_v57  ;;  %v740_v42 = vmul.f32 1.442695, %v715_v32  ;;  %v717_v56 = vsub.f32 %v1766_v45, %v689_v57 }
 0x2ee   :  { %1369 = vpow2.f32 %v728_v23  ;;  %v746_v54 = vmul.f32 1.442695, %v718_v53  ;;  %v721_v45 = vsub.f32 %v1808_v13, %v1861_v41  ;;  %v748_v58 = vmul.f32 1.442695, %v719_v55 }
 0x2ef   :  { %1371 = vpow2.f32 %v750_v29  ;;  %v742_v49 = vmul.f32 1.442695, %v716_v60  ;;  %v744_v37 = vmul.f32 1.442695, %v717_v56 }
 0x2f0   :  { %1373 = vpow2.f32 %v730_v38  ;;  %v752_v3 = vmul.f32 1.442695, %v721_v45 }
 0x2f1   :  { %1375 = vpow2.f32 %v732_v31 }
 0x2f2   :  { %1377 = vpow2.f32 %v734_v35 }
 0x2f3   :  { %1379 = vpow2.f32 %v736_v39 }
 0x2f4   :  { %v1868_v50 = vpop.eup %1361  ;;  %1381 = vpow2.f32 %v740_v42 }
 0x2f5   :  { %771 = vperm.xlu1 %1342, %v1868_v50   ;;  %v1873_v26 = vpop.eup %1363  ;;  %1383 = vpow2.f32 %v742_v49 }
 0x2f6   :  { %v1877_v27 = vpop.eup %1365  ;;  %1385 = vpow2.f32 %v744_v37 }
 0x2f7   :  { %v1879_v34 = vpop.eup %1367  ;;  %1387 = vpow2.f32 %v746_v54 }
 0x2f8   :  { %795 = vperm.xlu0 %1341, %v1879_v34   ;;  %v1884_v36 = vpop.eup %1369  ;;  %1389 = vpow2.f32 %v748_v58 }
 0x2f9   :  { %774 = vperm.xlu1 %1342, %v1873_v26   ;;  %v1887_v15 = vpop.eup %1371  ;;  %1391 = vpow2.f32 %v752_v3 }
 0x2fa   :  { %v1892_v40 = vpop.eup %1373 }
 0x2fb   :  { %v1896_v47 = vpop.eup %1375 }
 0x2fc   :  { %813 = vperm.xlu0 %1341, %v1887_v15   ;;  %v1901_v51 = vpop.eup %1377 }
 0x2fd   :  { %777 = vperm.xlu1 %1342, %v1877_v27   ;;  %v1905_v1 = vpop.eup %1379 }
 0x2fe   :  { %v1909_v30 = vpop.eup %1381 }
 0x2ff   :  { %v1914_v22 = vpop.eup %1383 }
 0x300   :  { %v1917_v59 = vpop.eup %1385 }
 0x301   :  { %780 = vperm.xlu1 %1342, %v1884_v36   ;;  %v1920_v14 = vpop.eup %1387 }
 0x302   :  { %v1923_v61 = vpop.eup %1389 }
 0x303   :  { %v1926_v13 = vpop.eup %1391 }
 0x305   :  { %783 = vperm.xlu1 %1342, %v1892_v40  }
 0x309   :  { %786 = vperm.xlu1 %1342, %v1896_v47  }
 0x30d   :  { %789 = vperm.xlu1 %1342, %v1901_v51  }
 0x311   :  { %792 = vperm.xlu1 %1342, %v1905_v1  }
 0x315   :  { %798 = vperm.xlu1 %1342, %v1909_v30  }
 0x319   :  { %801 = vperm.xlu1 %1342, %v1914_v22  }
 0x31d   :  { %804 = vperm.xlu1 %1342, %v1917_v59  }
 0x321   :  { %807 = vperm.xlu1 %1342, %v1920_v14  }
 0x325   :  { %810 = vperm.xlu1 %1342, %v1923_v61  }
 0x329   :  { %816 = vperm.xlu1 %1342, %v1926_v13  }
 0x374   :  { %v772_v62 = vpop.permute.xlu1 %771 }
 0x375   :  { %v821_v32 = vrot.slane %v772_v62, %v1819_v46 }
 0x377   :  { %v796_v10 = vpop.permute.xlu0 %795 }
 0x378   :  { %v775_v0 = vpop.permute.xlu1 %774  ;;  %v857_v48 = vrot.slane %v796_v10, %v1819_v46 }
 0x379   :  { %v825_v5 = vrot.slane %v775_v0, %v1816_v43 }
 0x37b   :  { %v826_v53 = vsel %vm581_vm2, %v825_v5, %v821_v32  ;;  %v814_v45 = vpop.permute.xlu0 %813 }
 0x37c   :  { %v778_v2 = vpop.permute.xlu1 %777 }
 0x37d   :  { %v830_v31 = vrot.slane %v778_v2, %v1819_v46 }
 0x380   :  { %v781_v41 = vpop.permute.xlu1 %780 }
 0x381   :  { %v834_v29 = vrot.slane %v781_v41, %v1816_v43 }
 0x383   :  { %v835_v39 = vsel %vm581_vm2, %v834_v29, %v830_v31 }
 0x384   :  { %v784_v12 = vpop.permute.xlu1 %783  ;;  %v890_v58 = vsel %vm646_vm3, %v835_v39, %v826_v53 }
 0x385   :  { %v839_v35 = vrot.slane %v784_v12, %v1819_v46 }
 0x388   :  { %v787_v18 = vpop.permute.xlu1 %786 }
 0x389   :  { %v843_v7 = vrot.slane %v787_v18, %v1816_v43 }
 0x38b   :  { %v844_v56 = vsel %vm581_vm2, %v843_v7, %v839_v35 }
 0x38c   :  { %v790_v44 = vpop.permute.xlu1 %789  ;;  %v891_v0 = vsel %vm648_vm4, %v844_v56, %v890_v58 }
 0x38d   :  { %v848_v60 = vrot.slane %v790_v44, %v1819_v46  ;;  %v884_v44 = vrot.slane %v814_v45, %v1819_v46  ;;  %v1113_v45 = vunpack.c.l.bf16 %v1633_v9 }
 0x390   :  { %v793_v21 = vpop.permute.xlu1 %792 }
 0x391   :  { %v852_v4 = vrot.slane %v793_v21, %v1816_v43 }
 0x393   :  { %v853_v37 = vsel %vm581_vm2, %v852_v4, %v848_v60 }
 0x394   :  { %v799_v52 = vpop.permute.xlu1 %798  ;;  %v892_v41 = vsel %vm650_vm5, %v853_v37, %v891_v0 }
 0x395   :  { %v861_v57 = vrot.slane %v799_v52, %v1816_v43 }
 0x397   :  { %v862_v3 = vsel %vm581_vm2, %v861_v57, %v857_v48 }
 0x398   :  { %v802_v33 = vpop.permute.xlu1 %801  ;;  %v893_v21 = vsel %vm652_vm6, %v862_v3, %v892_v41 }
 0x399   :  { %v866_v55 = vrot.slane %v802_v33, %v1819_v46 }
 0x39c   :  { %v805_v23 = vpop.permute.xlu1 %804 }
 0x39d   :  { %v870_v42 = vrot.slane %v805_v23, %v1816_v43 }
 0x39f   :  { %v871_v2 = vsel %vm581_vm2, %v870_v42, %v866_v55 }
 0x3a0   :  { %v808_v38 = vpop.permute.xlu1 %807  ;;  %v894_v33 = vsel %vm654_vm7, %v871_v2, %v893_v21 }
 0x3a1   :  { %v875_v62 = vrot.slane %v808_v38, %v1819_v46 }
 0x3a4   :  { %v811_v49 = vpop.permute.xlu1 %810 }
 0x3a5   :  { %v879_v54 = vrot.slane %v811_v49, %v1816_v43 }
 0x3a7   :  { %v880_v12 = vsel %vm581_vm2, %v879_v54, %v875_v62  ;;  %v1115_v62 = vunpack.c.l.bf16 %v1635_v11 }
 0x3a8   :  { %v817_v18 = vpop.permute.xlu1 %816  ;;  %v895_v29 = vsel %vm656_vm8, %v880_v12, %v894_v33 }
 0x3a9   :  { %v888_v52 = vrot.slane %v817_v18, %v1816_v43 }
 0x3ab   :  { %v889_v23 = vsel %vm581_vm2, %v888_v52, %v884_v44 }
 0x3ac   :  { %v896_v10 = vsel %vm658_vm9, %v889_v23, %v895_v29 }
 0x3ad   :  { %v898_v7 = vsel %vm661_vm10, %v896_v10, 0.0 }
 0x3ae   :  { %899 = vadd.xlane.f32.xlu0 %v898_v7 }
 0x43b   :  { %v900_v38 = vpop.xlane.xlu0 %899 }
 0x43c   :  { %v921_v5 = vrot.slane %v900_v38, %v1645_v16  ;;  %v905_v31 = vrot.slane %v900_v38, %v1631_v8  ;;  %v933_v4 = vrot.slane %v900_v38, %v1744_v63  ;;  %v909_v35 = vrot.slane %v900_v38, %v1648_v17 }
 0x43d   :  { %v913_v60 = vrot.slane %v900_v38, %v1671_v25  ;;  %v917_v17 = vrot.slane %v900_v38, %v1681_v28 }
 0x43e   :  { %1393 = vrcp.f32 %v921_v5 }
 0x43f   :  { %1395 = vrcp.f32 %v905_v31 }
 0x440   :  { %1397 = vrcp.f32 %v933_v4  ;;  %v1118_v4 = vunpack.c.h.bf16 %v1660_v20 }
 0x441   :  { %1399 = vrcp.f32 %v909_v35 }
 0x442   :  { %1401 = vrcp.f32 %v913_v60 }
 0x443   :  { %1403 = vrcp.f32 %v917_v17 }
 0x448   :  { %v1394_v57 = vpop.eup %1393 }
 0x449   :  { %v1396_v32 = vpop.eup %1395  ;;  %v955_v39 = vmul.f32 %v1394_v57, %v1879_v34 }
 0x44a   :  { %v1398_v42 = vpop.eup %1397  ;;  %v943_v48 = vmul.f32 %v1396_v32, %v1868_v50  ;;  %v944_v16 = vmul.f32 %v1396_v32, %v1873_v26 }
 0x44b   :  { %1007 = vperm.xlu0 %1341, %v955_v39   ;;  %v965_v8 = vmul.f32 %v1398_v42, %v1926_v13  ;;  %v1400_v63 = vpop.eup %1399  ;;  %v925_v13 = vrot.slane %v900_v38, %v1656_v19 }
 0x44c   :  { %983 = vperm.xlu1 %1342, %v943_v48   ;;  %v946_v56 = vmul.f32 %v1400_v63, %v1877_v27  ;;  %v947_v25 = vmul.f32 %v1400_v63, %v1884_v36  ;;  %v1402_v34 = vpop.eup %1401  ;;  %v929_v27 = vrot.slane %v900_v38, %v1668_v24  ;;  %v956_v36 = vmul.f32 %v1394_v57, %v1909_v30  ;;  %v1409_v57 = vld [vmem:[#allocation3 + $0x20] sm:$0xff]  }
 0x44d   :  { %v949_v50 = vmul.f32 %v1402_v34, %v1892_v40  ;;  %v950_v26 = vmul.f32 %v1402_v34, %v1896_v47  ;;  %v1404_v49 = vpop.eup %1403  ;;  %1405 = vrcp.f32 %v925_v13  ;;  %v1119_v32 = vunpack.c.l.bf16 %v1409_v57 }
 0x44e   :  { %v952_v28 = vmul.f32 %v1404_v49, %v1901_v51  ;;  %v953_v53 = vmul.f32 %v1404_v49, %v1905_v1  ;;  %1407 = vrcp.f32 %v929_v27  ;;  %v964_v1 = vmul.f32 %v1398_v42, %v1887_v15 }
 0x44f   :  { %1028 = vperm.xlu0 %1341, %v965_v8  }
 0x450   :  { %986 = vperm.xlu1 %1342, %v944_v16   ;;  %v1120_v16 = vunpack.c.h.bf16 %v1409_v57 }
 0x454   :  { %989 = vperm.xlu1 %1342, %v946_v56  }
 0x457   :  { %v1406_v40 = vpop.eup %1405 }
 0x458   :  { %992 = vperm.xlu1 %1342, %v947_v25   ;;  %v958_v19 = vmul.f32 %v1406_v40, %v1914_v22  ;;  %v959_v47 = vmul.f32 %v1406_v40, %v1917_v59  ;;  %v1408_v37 = vpop.eup %1407  ;;  %v1114_v22 = vunpack.c.h.bf16 %v1633_v9  ;;  %v1112_v59 = vunpack.c.h.bf16 %v1628_v6 }
 0x459   :  { %v961_v51 = vmul.f32 %v1408_v37, %v1920_v14  ;;  %v962_v24 = vmul.f32 %v1408_v37, %v1923_v61  ;;  %v1111_v14 = vunpack.c.l.bf16 %v1628_v6  ;;  %v1116_v9 = vunpack.c.h.bf16 %v1635_v11 }
 0x45a   :  { %v1117_v11 = vunpack.c.l.bf16 %v1660_v20 }
 0x45c   :  { %995 = vperm.xlu1 %1342, %v949_v50  }
 0x460   :  { %998 = vperm.xlu1 %1342, %v950_v26  }
 0x464   :  { %1001 = vperm.xlu1 %1342, %v952_v28  }
 0x468   :  { %1004 = vperm.xlu1 %1342, %v953_v53  }
 0x46c   :  { %1010 = vperm.xlu1 %1342, %v956_v36  }
 0x470   :  { %1013 = vperm.xlu1 %1342, %v958_v19   ;;  %v1410_v19 = vld [vmem:[#allocation3 + $0x28] sm:$0xff]  }
 0x474   :  { %1016 = vperm.xlu1 %1342, %v959_v47   ;;  %v1121_v47 = vunpack.c.l.bf16 %v1410_v19 }
 0x478   :  { %1019 = vperm.xlu1 %1342, %v961_v51  }
 0x47c   :  { %1022 = vperm.xlu1 %1342, %v962_v24  }
 0x480   :  { %1025 = vperm.xlu1 %1342, %v964_v1  }
 0x4ca   :  { %v2020_v42 = vpop.permute.xlu0 %1007 }
 0x4cb   :  { %v1985_v55 = vpop.permute.xlu1 %983  ;;  %v1151_v56 = vmul.f32 %v1119_v32, %v2020_v42 }
 0x4cc   :  { %v1143_v0 = vmul.f32 %v1111_v14, %v1985_v55  ;;  %v1122_v14 = vunpack.c.h.bf16 %v1410_v19 }
 0x4cd   :  { %v1195_v53 = vsel %vm148_vm0, %v1151_v56, 0.0 }
 0x4ce   :  { %v1159_v21 = vsel %vm148_vm0, %v1143_v0, 0.0 }
 0x4cf   :  { %v1987_v30 = vpop.permute.xlu1 %986 }
 0x4d0   :  { %v1144_v15 = vmul.f32 %v1112_v59, %v1987_v30 }
 0x4d2   :  { %v1160_v6 = vsel %vm148_vm0, %v1144_v15, 0.0 }
 0x4d3   :  { %v1989_v54 = vpop.permute.xlu1 %989  ;;  %v1161_v33 = vadd.f32 %v1160_v6, %v1159_v21  ;;  %v1069_v6 = vrot.slane %v2020_v42, %v1819_v46  ;;  %v1033_v21 = vrot.slane %v1985_v55, %v1819_v46 }
 0x4d4   :  { %v1145_v3 = vmul.f32 %v1113_v45, %v1989_v54 }
 0x4d5   :  { %v1162_v31 = vrot.slane %v1161_v33, 4 }
 0x4d6   :  { %v1168_v12 = vsel %vm148_vm0, %v1145_v3, 0.0  ;;  %v2038_v3 = vpop.permute.xlu0 %1028 }
 0x4d7   :  { %v1995_v58 = vpop.permute.xlu1 %992  ;;  %v1163_v63 = vadd.f32 %v1162_v31, %v1161_v33 }
 0x4d8   :  { %v1146_v61 = vmul.f32 %v1114_v22, %v1995_v58  ;;  %v2035_v22 = vld [vmem:[#allocation3 + $0x38] sm:$0xff]  }
 0x4d9   :  { %v1164_v49 = vrot.slane %v1163_v63, 2  ;;  %v1126_v59 = vunpack.c.h.bf16 %v2035_v22 }
 0x4da   :  { %v1169_v2 = vsel %vm148_vm0, %v1146_v61, 0.0  ;;  %v1412_v61 = vld [vmem:[#allocation3 + $0x30] sm:$0xff]  }
 0x4db   :  { %v2003_v41 = vpop.permute.xlu1 %995  ;;  %v1170_v18 = vadd.f32 %v1169_v2, %v1168_v12  ;;  %v1165_v45 = vadd.f32 %v1164_v49, %v1163_v63  ;;  %v1123_v15 = vunpack.c.l.bf16 %v1412_v61 }
 0x4dc   :  { %v1147_v44 = vmul.f32 %v1115_v62, %v2003_v41  ;;  %v1037_v62 = vrot.slane %v1987_v30, %v1816_v43  ;;  %v1158_v30 = vmul.f32 %v1126_v59, %v2038_v3  ;;  %v1051_v56 = vrot.slane %v2003_v41, %v1819_v46 }
 0x4dd   :  { %v1171_v29 = vrot.slane %v1170_v18, 4 }
 0x4de   :  { %v1177_v10 = vsel %vm148_vm0, %v1147_v44, 0.0  ;;  %v1125_v44 = vunpack.c.l.bf16 %v2035_v22  ;;  %v1038_v31 = vsel %vm581_vm2, %v1037_v62, %v1033_v21 }
 0x4df   :  { %v2010_v52 = vpop.permute.xlu1 %998  ;;  %v1172_v39 = vadd.f32 %v1171_v29, %v1170_v18 }
 0x4e0   :  { %v1148_v23 = vmul.f32 %v1116_v9, %v2010_v52  ;;  %v1124_v9 = vunpack.c.h.bf16 %v1412_v61  ;;  %v1055_v55 = vrot.slane %v2010_v52, %v1816_v43 }
 0x4e1   :  { %v1173_v25 = vrot.slane %v1172_v39, 2 }
 0x4e2   :  { %v1178_v7 = vsel %vm148_vm0, %v1148_v23, 0.0 }
 0x4e3   :  { %v1179_v38 = vadd.f32 %v1178_v7, %v1177_v10  ;;  %v2016_v5 = vpop.permute.xlu1 %1001  ;;  %v1174_v36 = vadd.f32 %v1173_v25, %v1172_v39  ;;  %v1166_v7 = vrot.slane %v1165_v45, 1 }
 0x4e4   :  { %v1149_v60 = vmul.f32 %v1117_v11, %v2016_v5  ;;  %v1046_v11 = vrot.slane %v1995_v58, %v1816_v43  ;;  %v1060_v52 = vrot.slane %v2016_v5, %v1819_v46 }
 0x4e5   :  { %v1180_v35 = vrot.slane %v1179_v38, 4  ;;  %v1175_v12 = vrot.slane %v1174_v36, 1 }
 0x4e6   :  { %v1186_v20 = vsel %vm148_vm0, %v1149_v60, 0.0 }
 0x4e7   :  { %v1181_v48 = vadd.f32 %v1180_v35, %v1179_v38  ;;  %v2022_v8 = vpop.permute.xlu1 %1004  ;;  %v1176_v32 = vadd.f32 %v1175_v12, %v1174_v36 }
 0x4e8   :  { %v1150_v17 = vmul.f32 %v1118_v4, %v2022_v8  ;;  %v1042_v4 = vrot.slane %v1989_v54, %v1819_v46  ;;  %v1064_v58 = vrot.slane %v2022_v8, %v1816_v43 }
 0x4e9   :  { %v1182_v50 = vrot.slane %v1181_v48, 2 }
 0x4ea   :  { %v1187_v34 = vsel %vm148_vm0, %v1150_v17, 0.0  ;;  %v1167_v17 = vadd.f32 %v1166_v7, %v1165_v45  ;;  %v1047_v54 = vsel %vm581_vm2, %v1046_v11, %v1042_v4 }
 0x4eb   :  { %v1188_v13 = vadd.f32 %v1187_v34, %v1186_v20  ;;  %v2028_v26 = vpop.permute.xlu1 %1010  ;;  %v1183_v37 = vadd.f32 %v1182_v50, %v1181_v48 }
 0x4ec   :  { %v1152_v28 = vmul.f32 %v1120_v16, %v2028_v26  ;;  %v1073_v20 = vrot.slane %v2028_v26, %v1816_v43  ;;  %v1239_v8 = vsel %vm646_vm3, %v1176_v32, %v1167_v17 }
 0x4ed   :  { %v1189_v27 = vrot.slane %v1188_v13, 4  ;;  %v1184_v33 = vrot.slane %v1183_v37, 1 }
 0x4ee   :  { %v1196_v40 = vsel %vm148_vm0, %v1152_v28, 0.0 }
 0x4ef   :  { %v1190_v51 = vadd.f32 %v1189_v27, %v1188_v13  ;;  %v1197_v24 = vadd.f32 %v1196_v40, %v1195_v53  ;;  %v2033_v1 = vpop.permute.xlu1 %1013  ;;  %v1185_v42 = vadd.f32 %v1184_v33, %v1183_v37  ;;  %v1056_v13 = vsel %vm581_vm2, %v1055_v55, %v1051_v56 }
 0x4f0   :  { %v1153_v18 = vmul.f32 %v1121_v47, %v2033_v1  ;;  %v1065_v27 = vsel %vm581_vm2, %v1064_v58, %v1060_v52  ;;  %v1078_v5 = vrot.slane %v2033_v1, %v1819_v46  ;;  %v1102_v37 = vsel %vm646_vm3, %v1047_v54, %v1038_v31 }
 0x4f1   :  { %v1191_v0 = vrot.slane %v1190_v51, 2  ;;  %v1198_v2 = vrot.slane %v1197_v24, 4  ;;  %v1240_v40 = vsel %vm648_vm4, %v1185_v42, %v1239_v8  ;;  %v1103_v59 = vsel %vm648_vm4, %v1056_v13, %v1102_v37 }
 0x4f2   :  { %v1204_v39 = vsel %vm148_vm0, %v1153_v18, 0.0  ;;  %v1104_v61 = vsel %vm650_vm5, %v1065_v27, %v1103_v59 }
 0x4f3   :  { %v1192_v23 = vadd.f32 %v1191_v0, %v1190_v51  ;;  %v1199_v29 = vadd.f32 %v1198_v2, %v1197_v24  ;;  %v1017_v10 = vpop.permute.xlu1 %1016  ;;  %v1074_v51 = vsel %vm581_vm2, %v1073_v20, %v1069_v6 }
 0x4f4   :  { %v1154_v38 = vmul.f32 %v1122_v14, %v1017_v10  ;;  %v1082_v49 = vrot.slane %v1017_v10, %v1816_v43  ;;  %v1105_v6 = vsel %vm652_vm6, %v1074_v51, %v1104_v61 }
 0x4f5   :  { %v1193_v35 = vrot.slane %v1192_v23, 1  ;;  %v1200_v57 = vrot.slane %v1199_v29, 2 }
 0x4f6   :  { %v1205_v60 = vsel %vm148_vm0, %v1154_v38, 0.0  ;;  %v1083_v45 = vsel %vm581_vm2, %v1082_v49, %v1078_v5 }
 0x4f7   :  { %v1201_v48 = vadd.f32 %v1200_v57, %v1199_v29  ;;  %v1206_v16 = vadd.f32 %v1205_v60, %v1204_v39  ;;  %v1020_v63 = vpop.permute.xlu1 %1019  ;;  %v1194_v25 = vadd.f32 %v1193_v35, %v1192_v23  ;;  %v1106_v33 = vsel %vm654_vm7, %v1083_v45, %v1105_v6 }
 0x4f8   :  { %v1155_v28 = vmul.f32 %v1123_v15, %v1020_v63  ;;  %v1087_v24 = vrot.slane %v1020_v63, %v1819_v46  ;;  %v1223_v23 = vsel %vm148_vm0, %v1158_v30, 0.0 }
 0x4f9   :  { %v1202_v34 = vrot.slane %v1201_v48, 1  ;;  %v1207_v50 = vrot.slane %v1206_v16, 4  ;;  %v1241_v47 = vsel %vm650_vm5, %v1194_v25, %v1240_v40 }
 0x4fa   :  { %v1213_v14 = vsel %vm148_vm0, %v1155_v28, 0.0 }
 0x4fb   :  { %v1203_v53 = vadd.f32 %v1202_v34, %v1201_v48  ;;  %v1208_v41 = vadd.f32 %v1207_v50, %v1206_v16  ;;  %v1023_v36 = vpop.permute.xlu1 %1022 }
 0x4fc   :  { %v1091_v26 = vrot.slane %v1023_v36, %v1816_v43  ;;  %v1156_v19 = vmul.f32 %v1124_v9, %v1023_v36  ;;  %v1100_v9 = vrot.slane %v2038_v3, %v1816_v43 }
 0x4fd   :  { %v1242_v22 = vsel %vm652_vm6, %v1203_v53, %v1241_v47  ;;  %v1209_v15 = vrot.slane %v1208_v41, 2 }
 0x4fe   :  { %v1214_v1 = vsel %vm148_vm0, %v1156_v19, 0.0  ;;  %v1092_v62 = vsel %vm581_vm2, %v1091_v26, %v1087_v24 }
 0x4ff   :  { %v1215_v0 = vadd.f32 %v1214_v1, %v1213_v14  ;;  %v1026_v2 = vpop.permute.xlu1 %1025  ;;  %v1107_v7 = vsel %vm656_vm8, %v1092_v62, %v1106_v33  ;;  %v1210_v11 = vadd.f32 %v1209_v15, %v1208_v41 }
 0x500   :  { %v1096_v12 = vrot.slane %v1026_v2, %v1819_v46  ;;  %v1157_v18 = vmul.f32 %v1125_v44, %v1026_v2 }
 0x501   :  { %v1216_v21 = vrot.slane %v1215_v0, 4 }
 0x502   :  { %v1101_v29 = vsel %vm581_vm2, %v1100_v9, %v1096_v12  ;;  %v1222_v10 = vsel %vm148_vm0, %v1157_v18, 0.0 }
 0x503   :  { %v1217_v38 = vadd.f32 %v1216_v21, %v1215_v0  ;;  %v1224_v43 = vadd.f32 %v1223_v23, %v1222_v10  ;;  %v1108_v3 = vsel %vm658_vm9, %v1101_v29, %v1107_v7 }
 0x504   :  { %1110 = vst.msk [vmem:[#allocation9] sm:$0xff] %vm661_vm10, %v1108_v3 }
 0x505   :  { %v1218_v46 = vrot.slane %v1217_v38, 2  ;;  %v1225_v44 = vrot.slane %v1224_v43, 4 }
 0x506   :  { %1490 = shalt.err (!%p1487_p0)
}
 0x507   :  { %s1491_s20 = scalar_lea.hbm %s2131_s6, 128 }
 0x508   :  { %p1492_p1 = scmp.ne.s32.totalorder %s2131_s6, %s1491_s20  ;;  %p1495_p2 = scmp.lt.u32.totalorder %s1491_s20, %s2131_s6 }
 0x50a   :  { %p1497_p3 = pnand %p1495_p2, %p1492_p1 }
 0x50c   :  { %1500 = shalt.err (!%p1497_p3)
}
 0x50d   :  { %1257 = dma.vmem_to_hbm [thread:$0]  %s1255_s4, 128, %s2131_s6, [#allocation5]   ;;  %v1211_v30 = vrot.slane %v1210_v11, 1  ;;  %v1219_v31 = vadd.f32 %v1218_v46, %v1217_v38  ;;  %v1226_v4 = vadd.f32 %v1225_v44, %v1224_v43 }
 0x50e   :  { %s1538_s26 = smov [#allocation10]  }
 0x50f   :  { %v1220_v35 = vrot.slane %v1219_v31, 1  ;;  %v1227_v57 = vrot.slane %v1226_v4, 2  ;;  %v1212_v32 = vadd.f32 %v1211_v30, %v1210_v11  ;;  %s1264_s27 = sshll.u32 %s1538_s26, 4  ;;  %s1265_s27 = int_to_ptr.vmem [resolvable:$true] %s1264_s27 }
 0x510   :  { %s1501_s6 = scalar_lea.vmem %s1265_s27, 128  ;;  %p1506_p5 = scmp.lt.s32.totalorder %s1265_s27, %s1265_s27 }
 0x511   :  { %v1228_v55 = vadd.f32 %v1227_v57, %v1226_v4  ;;  %v1221_v39 = vadd.f32 %v1220_v35, %v1219_v31  ;;  %v1243_v58 = vsel %vm654_vm7, %v1212_v32, %v1242_v22  ;;  %p1502_p4 = scmp.ne.s32.totalorder %s1265_s27, %s1501_s6  ;;  %p1507_p6 = scmp.lt.s32.totalorder %s1501_s6, %s1501_s6 }
 0x513   :  { %v1229_v60 = vrot.slane %v1228_v55, 1  ;;  %v1244_v48 = vsel %vm656_vm8, %v1221_v39, %v1243_v58  ;;  %p1508_p7 = por %p1507_p6, %p1506_p5 }
 0x515   :  { %v1230_v42 = vadd.f32 %v1229_v60, %v1228_v55  ;;  %p1509_p8 = pnand %p1508_p7, %p1502_p4 }
 0x517   :  { %v1245_v16 = vsel %vm658_vm9, %v1230_v42, %v1244_v48 }
 0x518   :  { %1247 = vst.msk [vmem:[#allocation10] sm:$0xff] %vm148_vm0, %v1245_v16 }
 0x519   :  { %1512 = shalt.err (!%p1509_p8)
}
 0x51a   :  { %s1513_s8 = scalar_lea.hbm %s2132_s7, 128 }
 0x51b   :  { %p1514_p9 = scmp.ne.s32.totalorder %s2132_s7, %s1513_s8  ;;  %p1517_p10 = scmp.lt.u32.totalorder %s1513_s8, %s2132_s7 }
 0x51d   :  { %p1519_p11 = pnand %p1517_p10, %p1514_p9 }
 0x51f   :  { %1522 = shalt.err (!%p1519_p11)
}
 0x520   :  { %1267 = dma.vmem_to_hbm [thread:$0]  %s1265_s27, 128, %s2132_s7, [#allocation11]  }
 0x521   :  { %1527 = dma.done.wait [#allocation5], 128  }
 0x522   :  { %1528 = vsyncadd [#allocation5], 4294967168 }
 0x523   :  { %1529 = dma.done.wait [#allocation11], 128  }
 0x524   :  { %1530 = vsyncadd [#allocation11], 4294967168 }
 0x525   :  { %1274 = vsyncpa [#allocation4], 1 }
 0x526   :  { %1275 = vsyncpa [#allocation7], 1 }
 0x527   :  { %1276 = vsyncpa [#allocation5], 1 }
 0x528   :  { %1277 = vsyncpa [#allocation11], 1 }

</bundles_post_ra>
